<compile_context>
chip_gen: v5e
topology: v5e:2x2
jax: 0.10.0
libtpu: 0.0.40
codegen_flags: <defaults>
</compile_context>

<pallas_src>
import itertools
import math

import numpy as np
import jax
import jax.numpy as jnp
from jax.experimental import pallas as pl
from jax.experimental.pallas import tpu as pltpu

_MASK_NEG = -1e30  # large-negative instead of -inf: exp() underflows to 0, no NaN paths


def _attention_kernel(q_ref, k_ref, v_ref, mask_ref, o_ref):
    # q_ref/k_ref/v_ref/o_ref: (Hblk, S, D) block; mask_ref: (S, S) additive log-mask.
    d = q_ref.shape[-1]
    scale = 1.0 / math.sqrt(d)          # python float -> stays in input dtype

    q = q_ref[...] * scale              # pre-scale q (S*D mul, not S*S divide)
    k = k_ref[...]
    v = v_ref[...]

    # scores on the MXU, f32 accumulation (operands keep input dtype -> bf16-capable)
    s = jnp.einsum("bqd,bkd->bqk", q, k, preferred_element_type=jnp.float32)
    # combined causal + distance mask, applied additively in log space
    s = s + mask_ref[...]

    # single numerically-stable softmax (the dmask renorm is already folded in)
    m = jnp.max(s, axis=-1, keepdims=True)
    e = jnp.exp(s - m)
    l = jnp.sum(e, axis=-1, keepdims=True)
    attn = e * pl.reciprocal(l, approx=True)          # EUP reciprocal + VPU mul

    out = jnp.einsum(
        "bqk,bkd->bqd", attn.astype(v.dtype), v, preferred_element_type=jnp.float32
    )
    o_ref[...] = out.astype(o_ref.dtype)


def _pick_heads_per_block(bh, s, d, itemsize, vmem_budget_bytes=24 * 1024 * 1024):
    """Largest head-block (divisor of bh) whose double-buffered working set fits
    the VMEM budget; prefer leaving >= 2 grid steps so both v7x TCs get work."""
    divisors = [h for h in range(1, bh + 1) if bh % h == 0]

    def fits(h):
        io = 4 * 2 * h * s * d * itemsize       # q, k, v, out — double-buffered
        mask = 2 * s * s * 4                    # combined additive mask (f32)
        interm = 3 * h * s * s * 4              # scores / exp / attn temporaries (f32)
        return io + mask + interm <= vmem_budget_bytes

    fitting = [h for h in divisors if fits(h)]
    if not fitting:
        return 1
    multi_step = [h for h in fitting if bh // h >= 2]
    return max(multi_step) if multi_step else max(fitting)


def _pallas_attention(q_flat, k_flat, v_flat, add_mask, heads_per_block=None):
    """q_flat/k_flat/v_flat: (BH, S, D); add_mask: (S, S) f32. Returns (BH, S, D)."""
    BH, S, D = q_flat.shape
    hb = heads_per_block or _pick_heads_per_block(BH, S, D, q_flat.dtype.itemsize)
    assert BH % hb == 0, (BH, hb)

    qkv_spec = pl.BlockSpec((hb, S, D), lambda i: (i, 0, 0))
    # single combined mask; constant index_map -> fetched once across the grid
    mask_spec = pl.BlockSpec((S, S), lambda i: (0, 0))

    return pl.pallas_call(
        _attention_kernel,
        out_shape=jax.ShapeDtypeStruct((BH, S, D), q_flat.dtype),
        grid_spec=pltpu.PrefetchScalarGridSpec(
            num_scalar_prefetch=0,
            grid=(BH // hb,),
            in_specs=[qkv_spec, qkv_spec, qkv_spec, mask_spec],
            out_specs=pl.BlockSpec((hb, S, D), lambda i: (i, 0, 0)),
        ),
        compiler_params=pltpu.CompilerParams(
            dimension_semantics=("parallel",),
            vmem_limit_bytes=64 * 1024 * 1024,
        ),
    )(q_flat, k_flat, v_flat, add_mask)


def make_full_attention_buffers(shape, causal=True, dist_mask=True):
    """Deterministic construction of the module's buffers/parameters."""
    seq_len = int(np.prod(shape))

    causal_mask = None
    if causal:
        causal_mask = np.tril(np.ones((seq_len, seq_len), dtype=np.float32))

    distance_mask = None
    if dist_mask:
        distance = np.zeros((seq_len, seq_len), dtype=np.float32)
        idxs = list(itertools.product(*[range(s) for s in shape]))
        for i in range(seq_len):
            for j in range(i, seq_len):
                d = sum(abs(idxs[i][kk] - idxs[j][kk]) for kk in range(len(shape)))
                distance[i, j] = d
                distance[j, i] = d
        max_distance = distance[0, seq_len - 1]
        distance_mask = np.exp(-distance / max_distance).astype(np.float32)

    return causal_mask, distance_mask


def make_additive_mask(seq_len, causal_mask=None, distance_mask=None):
    """Fold causal + distance masks into one additive log-space mask.

    softmax(scores + add_mask)
      == renorm(distance_mask * softmax(masked_fill(scores, causal==0, -inf)))
    (the first softmax denominator cancels in the renormalization).
    """
    if distance_mask is not None:
        add = np.log(np.asarray(distance_mask, dtype=np.float64)).astype(np.float32)
    else:
        add = np.zeros((seq_len, seq_len), dtype=np.float32)
    if causal_mask is not None:
        add = np.where(np.asarray(causal_mask) > 0, add, np.float32(_MASK_NEG))
    return jnp.asarray(add.astype(np.float32))


def full_attention_forward(q, k, v, add_mask):
    """q, k, v: (B, n_heads, *shape, d_head); add_mask: (S, S). Returns same shape as q."""
    B, H = q.shape[0], q.shape[1]
    old_shape = q.shape[2:-1]
    D = q.shape[-1]
    S = int(np.prod(old_shape))

    q_flat = q.reshape(B * H, S, D)
    k_flat = k.reshape(B * H, S, D)
    v_flat = v.reshape(B * H, S, D)

    out = _pallas_attention(q_flat, k_flat, v_flat, add_mask)
    return out.reshape(B, H, *old_shape, D)


def _reference_forward(q, k, v, causal_mask, distance_mask):
    """Pure-JAX reference mirroring the PyTorch scaled_dot_product_attention."""
    B, H = q.shape[0], q.shape[1]
    old_shape = q.shape[2:-1]
    D = q.shape[-1]
    S = int(np.prod(old_shape))
    qf = q.reshape(B, H, S, D).astype(jnp.float32)
    kf = k.reshape(B, H, S, D).astype(jnp.float32)
    vf = v.reshape(B, H, S, D).astype(jnp.float32)

    attn = jnp.einsum("bhqd,bhkd->bhqk", qf, kf) / np.sqrt(D)
    attn = jnp.where(causal_mask[None, None] == 0.0, -jnp.inf, attn)
    attn = jax.nn.softmax(attn, axis=-1)
    attn = distance_mask[None, None] * attn
    attn = attn / jnp.sum(attn, axis=-1, keepdims=True)
    out = jnp.einsum("bhqk,bhkd->bhqd", attn, vf)
    return out.reshape(B, H, *old_shape, D)


if __name__ == "__main__":
    # Module config: shape=(2, 4, 4) -> seq_len = 32, causal=True, dist_mask=True.
    shape = (2, 4, 4)
    seq_len = int(np.prod(shape))
    causal_mask, distance_mask = make_full_attention_buffers(
        shape, causal=True, dist_mask=True
    )
    add_mask = make_additive_mask(seq_len, causal_mask, distance_mask)

    B, n_heads, d_head = 2, 2, 32
    key = jax.random.PRNGKey(0)
    kq, kk, kv = jax.random.split(key, 3)
    q = jax.random.normal(kq, (B, n_heads, *shape, d_head), dtype=jnp.float32)
    k = jax.random.normal(kk, (B, n_heads, *shape, d_head), dtype=jnp.float32)
    v = jax.random.normal(kv, (B, n_heads, *shape, d_head), dtype=jnp.float32)

    out = full_attention_forward(q, k, v, add_mask)
    out = jax.block_until_ready(out)

    ref = _reference_forward(
        q, k, v, jnp.asarray(causal_mask), jnp.asarray(distance_mask)
    )
    ref = jax.block_until_ready(ref)

    assert out.shape == (B, n_heads, *shape, d_head), out.shape
    # Tolerance is loose enough for the EUP approximate reciprocal used in the
    # kernel's renormalization; masking/normalization bugs would show O(0.1) errors.
    np.testing.assert_allclose(np.asarray(out), np.asarray(ref), rtol=5e-3, atol=5e-3)

    print("KERNEL_OK")
</pallas_src>

<mosaic_0001>
module attributes {stable_mosaic.version = 11 : i64} {
  func.func @_attention_kernel(%arg0: i32, %arg1: memref<2x32x32xf32, #tpu.memory_space<vmem>>, %arg2: memref<2x32x32xf32, #tpu.memory_space<vmem>>, %arg3: memref<2x32x32xf32, #tpu.memory_space<vmem>>, %arg4: memref<32x32xf32, #tpu.memory_space<vmem>>, %arg5: memref<2x32x32xf32, #tpu.memory_space<vmem>>) attributes {dimension_semantics = [#tpu.dimension_semantics<parallel>], iteration_bounds = array<i64: 2>, scalar_prefetch = 0 : i64, scratch_operands = 0 : i64, tpu.core_type = #tpu.core_type<tc>, window_params = [{transform_indices = @transform_0, window_bounds = array<i64: 2, 32, 32>}, {transform_indices = @transform_1, window_bounds = array<i64: 2, 32, 32>}, {transform_indices = @transform_2, window_bounds = array<i64: 2, 32, 32>}, {pipeline_mode = #tpu.pipeline_mode<synchronous>, transform_indices = @transform_3, window_bounds = array<i64: 32, 32>}, {transform_indices = @transform_4, window_bounds = array<i64: 2, 32, 32>}]} {
    %c0 = arith.constant 0 : index
    %c0_0 = arith.constant 0 : index
    %c0_1 = arith.constant 0 : index
    %0 = vector.load %arg1[%c0, %c0_0, %c0_1] : memref<2x32x32xf32, #tpu.memory_space<vmem>>, vector<2x32x32xf32>
    %cst = arith.constant 0.176776692 : f32
    %1 = vector.broadcast %cst : f32 to vector<2x32x32xf32>
    %2 = arith.mulf %0, %1 : vector<2x32x32xf32>
    %c0_2 = arith.constant 0 : index
    %c0_3 = arith.constant 0 : index
    %c0_4 = arith.constant 0 : index
    %3 = vector.load %arg2[%c0_2, %c0_3, %c0_4] : memref<2x32x32xf32, #tpu.memory_space<vmem>>, vector<2x32x32xf32>
    %c0_5 = arith.constant 0 : index
    %c0_6 = arith.constant 0 : index
    %c0_7 = arith.constant 0 : index
    %4 = vector.load %arg3[%c0_5, %c0_6, %c0_7] : memref<2x32x32xf32, #tpu.memory_space<vmem>>, vector<2x32x32xf32>
    "tpu.trace_start"() <{level = 10 : i32, message = "bqd,bkd->bqk"}> : () -> ()
    %cst_8 = arith.constant dense<0.000000e+00> : vector<2x32x32xf32>
    %5 = tpu.matmul %2, %3, %cst_8 {dimension_numbers = #tpu.dot_dimension_numbers<[2], [2], [1], [1], [0, 0, 0, 1, 1, 1], [0], [0]>} : vector<2x32x32xf32>, vector<2x32x32xf32>, vector<2x32x32xf32> -> vector<2x32x32xf32>
    "tpu.trace_stop"() : () -> ()
    %c0_9 = arith.constant 0 : index
    %c0_10 = arith.constant 0 : index
    %6 = vector.load %arg4[%c0_9, %c0_10] : memref<32x32xf32, #tpu.memory_space<vmem>>, vector<32x32xf32>
    %7 = vector.shape_cast %6 : vector<32x32xf32> to vector<1x32x32xf32>
    %8 = vector.broadcast %7 : vector<1x32x32xf32> to vector<2x32x32xf32>
    %9 = arith.addf %5, %8 : vector<2x32x32xf32>
    %cst_11 = arith.constant dense<0xFF800000> : vector<2x32xf32>
    %10 = vector.multi_reduction <maximumf>, %9, %cst_11 [2] : vector<2x32x32xf32> to vector<2x32xf32>
    %11 = vector.shape_cast %10 : vector<2x32xf32> to vector<2x32x1xf32>
    %12 = vector.broadcast %11 : vector<2x32x1xf32> to vector<2x32x32xf32>
    %13 = arith.subf %9, %12 : vector<2x32x32xf32>
    %14 = math.exp %13 : vector<2x32x32xf32>
    %cst_12 = arith.constant dense<0.000000e+00> : vector<2x32xf32>
    %15 = vector.multi_reduction <add>, %14, %cst_12 [2] : vector<2x32x32xf32> to vector<2x32xf32>
    %16 = vector.shape_cast %15 : vector<2x32xf32> to vector<2x32x1xf32>
    %17 = tpu.reciprocal %16 {approx = true} : vector<2x32x1xf32> -> vector<2x32x1xf32>
    %18 = vector.broadcast %17 : vector<2x32x1xf32> to vector<2x32x32xf32>
    %19 = arith.mulf %14, %18 : vector<2x32x32xf32>
    "tpu.trace_start"() <{level = 10 : i32, message = "bqk,bkd->bqd"}> : () -> ()
    %cst_13 = arith.constant dense<0.000000e+00> : vector<2x32x32xf32>
    %20 = tpu.matmul %19, %4, %cst_13 {dimension_numbers = #tpu.dot_dimension_numbers<[2], [1], [1], [2], [0, 0, 0, 1, 1, 2], [0], [0]>} : vector<2x32x32xf32>, vector<2x32x32xf32>, vector<2x32x32xf32> -> vector<2x32x32xf32>
    "tpu.trace_stop"() : () -> ()
    %c0_14 = arith.constant 0 : index
    %c0_15 = arith.constant 0 : index
    %c0_16 = arith.constant 0 : index
    %21 = vector.load %arg5[%c0_14, %c0_15, %c0_16] : memref<2x32x32xf32, #tpu.memory_space<vmem>>, vector<2x32x32xf32>
    tpu.vector_store %arg5[%c0_14, %c0_15, %c0_16], %20 {strides = array<i32>} : memref<2x32x32xf32, #tpu.memory_space<vmem>>, vector<2x32x32xf32>,
    return
  }
  func.func @transform_0(%arg0: i32) -> (i32, i32, i32) {
    %c0_i32 = arith.constant 0 : i32
    %c0_i32_0 = arith.constant 0 : i32
    %c0_i32_1 = arith.constant 0 : i32
    return %arg0, %c0_i32, %c0_i32_0 : i32, i32, i32
  }
  func.func @transform_1(%arg0: i32) -> (i32, i32, i32) {
    %c0_i32 = arith.constant 0 : i32
    %c0_i32_0 = arith.constant 0 : i32
    %c0_i32_1 = arith.constant 0 : i32
    return %arg0, %c0_i32, %c0_i32_0 : i32, i32, i32
  }
  func.func @transform_2(%arg0: i32) -> (i32, i32, i32) {
    %c0_i32 = arith.constant 0 : i32
    %c0_i32_0 = arith.constant 0 : i32
    %c0_i32_1 = arith.constant 0 : i32
    return %arg0, %c0_i32, %c0_i32_0 : i32, i32, i32
  }
  func.func @transform_3(%arg0: i32) -> (i32, i32) {
    %c0_i32 = arith.constant 0 : i32
    %c0_i32_0 = arith.constant 0 : i32
    %c0_i32_1 = arith.constant 0 : i32
    return %c0_i32, %c0_i32_0 : i32, i32
  }
  func.func @transform_4(%arg0: i32) -> (i32, i32, i32) {
    %c0_i32 = arith.constant 0 : i32
    %c0_i32_0 = arith.constant 0 : i32
    %c0_i32_1 = arith.constant 0 : i32
    return %arg0, %c0_i32, %c0_i32_0 : i32, i32, i32
  }
}

</mosaic_0001>

<bundles_post_ra>
// kernel: tpu_custom_call.1
= control target key start
LH: loop header
LB: loop body
LE: loop exit
PB: predicated region body
PF: predicated region fallthrough
CT: control target
= control target key end

     0   :  { %s1471_s0 = inlined_call_operand.hbm [shape: f32[4,32,32], index: 0, kind: input, shape index: {}]   ;;  %s1472_s1 = inlined_call_operand.hbm [shape: f32[4,32,32], index: 1, kind: input, shape index: {}]   ;;  %s1473_s2 = inlined_call_operand.hbm [shape: f32[4,32,32], index: 2, kind: input, shape index: {}]   ;;  %s1474_s3 = inlined_call_operand.hbm [shape: f32[32,32], index: 3, kind: input, shape index: {}]   ;;  %s1475_s4 = inlined_call_operand.hbm [shape: f32[4,32,32], index: 4, kind: output, shape index: {}]  }
   0x1   :  { %1479 = sst [smem:[#allocation17_spill]] %s1472_s1 }
   0x2   :  { %1480 = sst [smem:[#allocation18_spill]] %s1474_s3 }
   0x3   :  { %9 = vsyncpa [#allocation3], 0 }
   0x4   :  { %11 = vsyncpa [#allocation3 + $0x1], 0 }
   0x5   :  { %12 = vsyncpa [#allocation6], 0 }
   0x6   :  { %14 = vsyncpa [#allocation6 + $0x1], 0 }
   0x7   :  { %15 = vsyncpa [#allocation9], 0 }
   0x8   :  { %16 = vsyncpa [#allocation4], 0 }
   0x9   :  { %18 = vsyncpa [#allocation4 + $0x1], 0  ;;  %s1176_s15 = smov 0   ;;  %s1178_s16 = smov 0  }
   0xa   :  { %s1180_s17 = smov 0   ;;  %s1182_s18 = smov 0  }
   0xb LB: > { %s1197_s19 = sadd.s32 1, %s1144_s18   ;;  %s31_s20 = sadd.s32 1, %s1140_s17  ;;  %s1144_s18 = sphi %s1182_s18, %s1492_s18   ;;  %s1140_s17 = sphi %s1180_s17, %s1496_s17   ;;  %s1136_s16 = sphi %s1178_s16, %s1495_s16   ;;  %s1132_s15 = sphi %s1176_s15, %s1494_s15  }
   0xc   : > { %1481 = sst [smem:[#allocation15_spill]] %s1197_s19  ;;  %s28_s21 = ssub.s32 %s1144_s18, %s1197_s19 }
   0xd   : > { %p38_p0 = scmp.ne.s32.totalorder %s1140_s17, %s1136_s16  ;;  %p29_p1 = scmp.eq.s32.totalorder %s28_s21, 0 }
   0xe   : > { %p39_p2 = scmp.eq.s32.totalorder %s1144_s18, 0  ;;  %p878_p5 = scmp.lt.s32.totalorder %s1144_s18, 2 }
   0xf   : > { %s1206_s22 = scalar_select %p29_p1, %s1140_s17, %s31_s20  }
  0x10   : > { %p40_p3 = por %p39_p2, %p38_p0  ;;  %s1476_s23 = sand.u32 1, %s1140_s17  }
  0x11   : > { %1482 = sst [smem:[#allocation16_spill]] %s1206_s22  ;;  %s1216_s24 = sshll.u32 %s1476_s23, 6 }
  0x12   : > { %s1219_s25 = sshll.u32 %s1144_s18, 6  ;;  %p1221_p6 = pnand %p878_p5, %p40_p3 }
  0x13   : > { %s204_s27 = sand.u32 1, %s1144_s18   ;;  %s1484_s1 = sld [smem:[#allocation17_spill]] }
  0x14   : > { %s208_s6 = scalar_lea.vmem [#allocation5], %s1216_s24  ;;  %s1231_s8 = scalar_lea.sflag [#allocation6], %s204_s27 }
  0x15   : > { %s217_s7 = sshll.u32 %s208_s6, 4  ;;  %p954_p8 = pneg %p1221_p6  ;;  %s218_s7 = int_to_ptr.vmem [resolvable:$true] %s217_s7 }
  0x19   : > { %s214_s30 = scalar_lea.hbm %s1484_s1, %s1219_s25  ;;  %s957_s13 = scalar_lea.hbm %s1484_s1, 128 }
  0x1a   : > { %s215_s5 = sshll.u32 %s214_s30, 4  ;;  %s216_s5 = int_to_ptr.hbm [resolvable:$true] %s215_s5 }
  0x1b   : > { %s950_s9 = sshra.s32 %s216_s5, 4  ;;  %s951_s9 = int_to_ptr.hbm [resolvable:$true] %s950_s9 }
  0x1c   : > { %s952_s10 = scalar_lea.hbm %s951_s9, 64  ;;  %p958_p11 = scmp.lt.s32.totalorder %s951_s9, %s1484_s1 }
  0x1d   : > { %p953_p7 = scmp.ne.s32.totalorder %s951_s9, %s952_s10  ;;  %p959_p12 = scmp.lt.s32.totalorder %s957_s13, %s952_s10 }
  0x1f   : > { %p955_p9 = pnand %p954_p8, %p953_p7  ;;  %p960_p13 = por %p959_p12, %p958_p11 }
  0x21   : > { %p956_p10 = pneg %p955_p9 }
  0x23   : > { %p961_p1 = pnand %p960_p13, %p956_p10 }
  0x25   : > { %964 = shalt.err (!%p961_p1)
}
  0x26   : > { %s1146_s21 = smov 128   ;;  %s1147_s27 = smov 8  }
  0x27   : > { %869 = dma.hbm_to_vmem [thread:$0]  (!%p1221_p6), %s216_s5, 1024, %s218_s7, %s1231_s8, %s1146_s21, %s1146_s21, %s1147_s27  }
  0x28   : > { %s1251_s28 = sadd.s32 4294967295, %s1144_s18   ;;  %s787_s29 = sadd.s32 4294967294, %s1144_s18  }
  0x29   : > { %p44_p2 = scmp.ne.s32.totalorder %s1136_s16, %s1132_s15  ;;  %p45_p3 = scmp.eq.s32.totalorder %s1251_s28, 0 }
  0x2a   : > { %p141_p5 = scmp.eq.s32.totalorder %s1251_s28, 1  ;;  %p147_p7 = scmp.eq.s32.totalorder %s787_s29, 1 }
  0x2b   : > { %p1260_p9 = por %p45_p3, %p44_p2  ;;  %p788_p10 = scmp.ge.s32.totalorder %s1144_s18, 1 }
  0x2c   : > { %p1268_p11 = por %p141_p5, %p38_p0  ;;  %p1272_p12 = por %p147_p7, %p44_p2 }
  0x2d   : > { %p154_p13 = scmp.lt.s32.totalorder %s1144_s18, 3  ;;  %s1488_s3 = sld [smem:[#allocation18_spill]] }
  0x2e   : > { %s1148_s12 = smov [#allocation8]   ;;  %s191_s29 = scalar_lea.hbm %s1471_s0, %s1219_s25 }
  0x2f   : > { %p1280_p1 = pnand %p788_p10, %p154_p13  ;;  %s167_s13 = sshll.u32 %s1148_s12, 4  ;;  %s168_s13 = int_to_ptr.vmem [resolvable:$true] %s167_s13 }
  0x30   : > { %s192_s7 = sshll.u32 %s191_s29, 4  ;;  %s185_s9 = scalar_lea.vmem [#allocation2], %s1216_s24  ;;  %s193_s7 = int_to_ptr.hbm [resolvable:$true] %s192_s7 }
  0x31   : > { %p859_p0 = pneg %p1280_p1  ;;  %s194_s23 = sshll.u32 %s185_s9, 4  ;;  %s195_s23 = int_to_ptr.vmem [resolvable:$true] %s194_s23 }
  0x32   : > { %s1490_s12 = sand.u32 1, %s1140_s17   ;;  %s1017_s29 = scalar_lea.hbm %s1471_s0, 128 }
  0x33   : > { %s165_s10 = sshll.u32 %s1488_s3, 4  ;;  %p860_p2 = pnand %p859_p0, %p45_p3  ;;  %s166_s10 = int_to_ptr.hbm [resolvable:$true] %s165_s10 }
  0x34   : > { %s182_s1 = scalar_lea.sflag [#allocation3], %s1490_s12  ;;  %s1010_s3 = sshra.s32 %s193_s7, 4  ;;  %s1011_s3 = int_to_ptr.hbm [resolvable:$true] %s1010_s3 }
  0x35   : > { %862 = dma.hbm_to_vmem [thread:$0]  (!%p860_p2), %s166_s10, 512, %s168_s13, [#allocation9], %s1146_s21, %s1146_s21, %s1147_s27  }
  0x36   : > { %s1012_s22 = scalar_lea.hbm %s1011_s3, 64  ;;  %p1018_p13 = scmp.lt.s32.totalorder %s1011_s3, %s1471_s0 }
  0x37   : > { %p1013_p5 = scmp.ne.s32.totalorder %s1011_s3, %s1012_s22  ;;  %p1019_p0 = scmp.lt.s32.totalorder %s1017_s29, %s1012_s22 }
  0x39   : > { %p1015_p7 = pnand %p1013_p5, %p954_p8  ;;  %p1020_p2 = por %p1019_p0, %p1018_p13 }
  0x3b   : > { %p1016_p10 = pneg %p1015_p7 }
  0x3d   : > { %p1021_p4 = pnand %p1020_p2, %p1016_p10 }
  0x3f   : > { %1024 = shalt.err (!%p1021_p4)
}
  0x40   : > { %866 = dma.hbm_to_vmem [thread:$0]  (!%p1221_p6), %s193_s7, 1024, %s195_s23, %s182_s1, %s1146_s21, %s1146_s21, %s1147_s27  }
  0x41   : > { %s237_s12 = scalar_lea.hbm %s1473_s2, %s1219_s25  ;;  %s231_s19 = scalar_lea.vmem [#allocation7], %s1216_s24 }
  0x42   : > { %s238_s14 = sshll.u32 %s237_s12, 4  ;;  %s240_s3 = sshll.u32 %s231_s19, 4  ;;  %s239_s14 = int_to_ptr.hbm [resolvable:$true] %s238_s14  ;;  %s241_s3 = int_to_ptr.vmem [resolvable:$true] %s240_s3 }
  0x43   : > { %s1040_s22 = sshra.s32 %s239_s14, 4  ;;  %s1047_s1 = scalar_lea.hbm %s1473_s2, 128  ;;  %s1041_s22 = int_to_ptr.hbm [resolvable:$true] %s1040_s22 }
  0x44   : > { %s1042_s20 = scalar_lea.hbm %s1041_s22, 64  ;;  %p1048_p10 = scmp.lt.s32.totalorder %s1041_s22, %s1473_s2 }
  0x45   : > { %p1043_p4 = scmp.ne.s32.totalorder %s1041_s22, %s1042_s20  ;;  %p1049_p13 = scmp.lt.s32.totalorder %s1047_s1, %s1042_s20 }
  0x47   : > { %p1045_p5 = pnand %p1043_p4, %p954_p8  ;;  %p1050_p0 = por %p1049_p13, %p1048_p10 }
  0x49   : > { %p1046_p7 = pneg %p1045_p5 }
  0x4b   : > { %p1051_p2 = pnand %p1050_p0, %p1046_p7 }
  0x4d   : > { %1054 = shalt.err (!%p1051_p2)
}
  0x4e   : > { %872 = dma.hbm_to_vmem [thread:$0]  (!%p1221_p6), %s239_s14, 1024, %s241_s3, %s1231_s8, %s1146_s21, %s1146_s21, %s1147_s27  }
  0x4f   : > { %252 = sbr.rel (%p1280_p1) target bundleno = 657 (0x291), region = 36  ;;  %s1335_s24 = sand.u32 (!%p1280_p1), 1, %s1136_s16  }
  0x50   : > { %s1338_s25 = sshll.u32 (!%p1280_p1), %s1335_s24, 6  ;;  %s255_s10 = scalar_lea.sflag (!%p1280_p1), [#allocation3], %s1335_s24 }
  0x51   : > { %s1342_s13 = scalar_lea.vmem (!%p1280_p1), [#allocation2], %s1338_s25 }
  0x54   : > { %1115 = dma.done.wait (%p1260_p9), %s255_s10, 1024  }
  0x55   : > { %1117 = vsyncadd (%p1260_p9), %s255_s10, 4294966272  ;;  %s264_s26 = sand.u32 1, %s1251_s28   ;;  %s268_s21 = scalar_lea.vmem [#allocation5], %s1338_s25 }
  0x56   : > { %s265_s8 = scalar_lea.sflag [#allocation6], %s264_s26 }
  0x57   : > { %1119 = dma.done.wait (%p1260_p9), %s265_s8, 2048  }
  0x58   : > { %1121 = vsyncadd (%p1260_p9), %s265_s8, 4294965248  ;;  %s1355_s27 = scalar_lea.vmem [#allocation7], %s1338_s25 }
  0x59   : > { %1123 = dma.done.wait (%p45_p3), [#allocation9], 512  }
  0x5a   : > { %1125 = vsyncadd (%p45_p3), [#allocation9], 4294966784  ;;  %vm359_vm0 = vcmask 261120   ;;  %v342_v0 = vld [vmem:[%s268_s21 + $0x18] sm:$0xff]  ;;  %v341_v2 = vld [vmem:[%s268_s21 + $0x10] sm:$0xff]  ;;  %s318_s30 = scalar_lea.vmem [#allocation10], %s1338_s25 }
  0x5b   : > { %v346_v1 = vld [vmem:[%s268_s21 + $0x38] sm:$0xff]  ;;  %809 = vmatpush.xpose.msk.msra.mxu0 %vm359_vm0, %v342_v0  ;;  %v345_v3 = vld [vmem:[%s268_s21 + $0x30] sm:$0xff]  ;;  %v340_v4 = vld [vmem:[%s268_s21 + $0x8] sm:$0xff]  ;;  %s846_s11 = sshll.u32 %s1251_s28, 6  ;;  %s658_s3 = sshll.u32 %s318_s30, 4  ;;  %s659_s3 = int_to_ptr.vmem [resolvable:$true] %s658_s3 }
  0x5c   : > { %817 = vmatpush.xpose.msk.msra.mxu1 %vm359_vm0, %v346_v1  ;;  %v344_v5 = vld [vmem:[%s268_s21 + $0x28] sm:$0xff]  ;;  %v323_v6 = vld [vmem:[%s1342_s13] sm:$0xff]  ;;  %v325_v16 = vld [vmem:[%s1342_s13 + $0x10] sm:$0xff]  ;;  %s657_s19 = scalar_lea.hbm %s1475_s4, %s846_s11  ;;  %s645_s20 = scalar_lea.sflag [#allocation4], %s1335_s24 }
  0x5d   : > { %v327_v7 = vld [vmem:[%s1342_s13 + $0x20] sm:$0xff]  ;;  %v331_v10 = vmul.f32 0.17677669, %v323_v6  ;;  %v324_v12 = vld [vmem:[%s1342_s13 + $0x8] sm:$0xff]  ;;  %v329_v17 = vld [vmem:[%s1342_s13 + $0x30] sm:$0xff]  ;;  %s660_s22 = sshll.u32 %s657_s19, 4  ;;  %s661_s22 = int_to_ptr.hbm [resolvable:$true] %s660_s22 }
  0x5e   : > { %v339_v8 = vld [vmem:[%s268_s21] sm:$0xff]  ;;  %v335_v11 = vmul.f32 0.17677669, %v327_v7  ;;  %v328_v13 = vld [vmem:[%s1342_s13 + $0x28] sm:$0xff]  ;;  %v332_v14 = vmul.f32 0.17677669, %v324_v12 }
  0x5f   : > { %810 = vmatpush.xpose.msk.msra.mxu0 %vm359_vm0, %v341_v2  ;;  %v343_v9 = vld [vmem:[%s268_s21 + $0x20] sm:$0xff]  ;;  %v336_v15 = vmul.f32 0.17677669, %v328_v13  ;;  %v333_v18 = vmul.f32 0.17677669, %v325_v16  ;;  %v326_v20 = vld [vmem:[%s1342_s13 + $0x18] sm:$0xff] }
  0x60   : > { %818 = vmatpush.xpose.msk.msra.mxu1 %vm359_vm0, %v345_v3  ;;  %v337_v19 = vmul.f32 0.17677669, %v329_v17  ;;  %v330_v21 = vld [vmem:[%s1342_s13 + $0x38] sm:$0xff]  ;;  %v334_v22 = vmul.f32 0.17677669, %v326_v20  ;;  %v355_v24 = vld [vmem:[#allocation8] sm:$0xff] }
  0x61   : > { %v338_v23 = vmul.f32 0.17677669, %v330_v21  ;;  %v356_v30 = vld [vmem:[#allocation8 + $0x8] sm:$0xff]  ;;  %v357_v37 = vld [vmem:[#allocation8 + $0x10] sm:$0xff]  ;;  %v358_v44 = vld [vmem:[#allocation8 + $0x18] sm:$0xff]  ;;  %s1084_s28 = sshra.s32 %s661_s22, 4  ;;  %s1085_s28 = int_to_ptr.hbm [resolvable:$true] %s1084_s28 }
  0x62   : > { %s1086_s29 = scalar_lea.hbm %s1085_s28, 64  ;;  %s1090_s23 = scalar_lea.hbm %s1475_s4, 128 }
  0x63   : > { %811 = vmatpush.xpose.msk.msra.mxu0 %vm359_vm0, %v340_v4  ;;  %p1087_p6 = scmp.ne.s32.totalorder %s1085_s28, %s1086_s29  ;;  %p1091_p9 = scmp.lt.s32.totalorder %s1085_s28, %s1475_s4 }
  0x64   : > { %819 = vmatpush.xpose.msk.msra.mxu1 %vm359_vm0, %v344_v5  ;;  %p1092_p1 = scmp.lt.s32.totalorder %s1090_s23, %s1086_s29 }
  0x65   : > { %p1088_p8 = pnand %p1087_p6, %p1268_p11 }
  0x66   : > { %p1093_p4 = por %p1092_p1, %p1091_p9 }
  0x67   : > { %812 = vmatpush.xpose.msk.msra.mxu0 %vm359_vm0, %v339_v8  ;;  %p1089_p3 = pneg %p1088_p8 }
  0x68   : > { %820 = vmatpush.xpose.msk.msra.mxu1 %vm359_vm0, %v343_v9 }
  0x69   : > { %p1094_p5 = pnand %p1093_p4, %p1089_p3 }
  0x6a   : > { %813 = vmatmul.msk.f32.vlgmr.msra.gmra.mxu0 %vm359_vm0, %v331_v10 }
  0x6b   : > { %821 = vmatmul.msk.f32.vlgmr.msra.gmra.mxu1 %vm359_vm0, %v335_v11 }
  0x72   : > { %814 = vmatmul.msk.f32.gmra.mxu0 %vm359_vm0, %v332_v14 }
  0x73   : > { %822 = vmatmul.msk.f32.gmra.mxu1 %vm359_vm0, %v336_v15 }
  0x7a   : > { %815 = vmatmul.msk.f32.gmra.mxu0 %vm359_vm0, %v333_v18 }
  0x7b   : > { %823 = vmatmul.msk.f32.gmra.mxu1 %vm359_vm0, %v337_v19 }
  0x82   : > { %816 = vmatmul.msk.f32.gmra.mxu0 %vm359_vm0, %v334_v22 }
  0x83   : > { %824 = vmatmul.msk.f32.gmra.mxu1 %vm359_vm0, %v338_v23 }
  0xe7   : > { %v401_v25 = vpop.f32.mrf.mxu0 }
  0xe8   : > { %v454_v26 = vpop.f32.mrf.mxu1  ;;  %v402_v27 = vadd.f32 %v401_v25, %v355_v24 }
  0xe9   : > { %v455_v29 = vadd.f32 %v454_v26, %v355_v24 }
  0xea   : > { %v466_v28 = vsel %vm359_vm0, %v402_v27, -inf }
  0xeb   : > { %467 = vmax.xlane.f32.xlu0 %v466_v28  ;;  %v478_v34 = vsel %vm359_vm0, %v455_v29, -inf  ;;  %v350_v28 = vld [vmem:[%s1355_s27 + $0x18] sm:$0xff] }
  0xec   : > { %578 = vmatpush.msra.mxu2 %v350_v28 }
  0xef   : > { %v404_v31 = vpop.f32.mrf.mxu0 }
  0xf0   : > { %v457_v32 = vpop.f32.mrf.mxu1  ;;  %v405_v33 = vadd.f32 %v404_v31, %v356_v30  ;;  %v347_v31 = vld [vmem:[%s1355_s27] sm:$0xff] }
  0xf1   : > { %v458_v36 = vadd.f32 %v457_v32, %v356_v30  ;;  %v348_v30 = vld [vmem:[%s1355_s27 + $0x8] sm:$0xff]  ;;  %v354_v32 = vld [vmem:[%s1355_s27 + $0x38] sm:$0xff] }
  0xf2   : > { %v469_v35 = vsel %vm359_vm0, %v405_v33, -inf  ;;  %619 = vmatpush.msra.mxu3 %v354_v32 }
  0xf3   : > { %470 = vmax.xlane.f32.xlu1 %v469_v35  ;;  %479 = vmax.xlane.f32.xlu0 %v478_v34  ;;  %v481_v41 = vsel %vm359_vm0, %v458_v36, -inf  ;;  %v352_v34 = vld [vmem:[%s1355_s27 + $0x28] sm:$0xff]  ;;  %v351_v35 = vld [vmem:[%s1355_s27 + $0x20] sm:$0xff] }
  0xf7   : > { %v407_v38 = vpop.f32.mrf.mxu0 }
  0xf8   : > { %v460_v39 = vpop.f32.mrf.mxu1  ;;  %v408_v40 = vadd.f32 %v407_v38, %v357_v37 }
  0xf9   : > { %v461_v43 = vadd.f32 %v460_v39, %v357_v37 }
  0xfa   : > { %v472_v42 = vsel %vm359_vm0, %v408_v40, -inf }
  0xfb   : > { %473 = vmax.xlane.f32.xlu2 %v472_v42  ;;  %482 = vmax.xlane.f32.xlu1 %v481_v41  ;;  %v484_v49 = vsel %vm359_vm0, %v461_v43, -inf }
  0xff   : > { %v410_v45 = vpop.f32.mrf.mxu0 }
 0x100   : > { %v463_v46 = vpop.f32.mrf.mxu1  ;;  %v411_v47 = vadd.f32 %v410_v45, %v358_v44 }
 0x101   : > { %v464_v48 = vadd.f32 %v463_v46, %v358_v44 }
 0x102   : > { %v475_v51 = vsel %vm359_vm0, %v411_v47, -inf }
 0x103   : > { %v487_v50 = vsel %vm359_vm0, %v464_v48, -inf  ;;  %485 = vmax.xlane.f32.xlu2 %v484_v49  ;;  %476 = vmax.xlane.f32.xlu0 %v475_v51 }
 0x104   : > { %488 = vmax.xlane.f32.xlu1 %v487_v50 }
 0x15e   : > { %v468_v52 = vpop.xlane.xlu0 %467 }
 0x15f   : > { %v490_v53 = vsub.f32 %v402_v27, %v468_v52 }
 0x161   : > { %v498_v54 = vmul.f32 1.442695, %v490_v53 }
 0x163   : > { %918 = vpow2.f32 %v498_v54 }
 0x166   : > { %v471_v55 = vpop.xlane.xlu1 %470  ;;  %v480_v56 = vpop.xlane.xlu0 %479 }
 0x167   : > { %v491_v57 = vsub.f32 %v405_v33, %v471_v55  ;;  %v494_v58 = vsub.f32 %v455_v29, %v480_v56  ;;  %v349_v29 = vld [vmem:[%s1355_s27 + $0x10] sm:$0xff] }
 0x168   : > { %579 = vmatpush.msra.mxu2 %v349_v29  ;;  %v353_v33 = vld [vmem:[%s1355_s27 + $0x30] sm:$0xff] }
 0x169   : > { %v1393_v59 = vpop.eup %918  ;;  %v500_v60 = vmul.f32 1.442695, %v491_v57  ;;  %v506_v61 = vmul.f32 1.442695, %v494_v58  ;;  %620 = vmatpush.msra.mxu3 %v353_v33 }
 0x16a   : > { %v514_v62 = vsel %vm359_vm0, %v1393_v59, 0.0  ;;  %580 = vmatpush.msra.mxu2 %v348_v30 }
 0x16b   : > { %920 = vpow2.f32 %v500_v60  ;;  %515 = vadd.xlane.f32.xlu2 %v514_v62  ;;  %621 = vmatpush.msra.mxu3 %v352_v34 }
 0x16c   : > { %922 = vpow2.f32 %v506_v61  ;;  %581 = vmatpush.msra.mxu2 %v347_v31 }
 0x16d   : > { %622 = vmatpush.msra.mxu3 %v351_v35 }
 0x16e   : > { %v474_v63 = vpop.xlane.xlu2 %473  ;;  %v483_v0 = vpop.xlane.xlu1 %482 }
 0x16f   : > { %v492_v1 = vsub.f32 %v408_v40, %v474_v63  ;;  %v495_v2 = vsub.f32 %v458_v36, %v483_v0 }
 0x171   : > { %v1397_v3 = vpop.eup %920  ;;  %v502_v4 = vmul.f32 1.442695, %v492_v1  ;;  %v508_v5 = vmul.f32 1.442695, %v495_v2 }
 0x172   : > { %v1399_v6 = vpop.eup %922  ;;  %v517_v7 = vsel %vm359_vm0, %v1397_v3, 0.0 }
 0x173   : > { %924 = vpow2.f32 %v502_v4  ;;  %518 = vadd.xlane.f32.xlu1 %v517_v7  ;;  %v526_v8 = vsel %vm359_vm0, %v1399_v6, 0.0 }
 0x174   : > { %926 = vpow2.f32 %v508_v5  ;;  %527 = vadd.xlane.f32.xlu0 %v526_v8 }
 0x176   : > { %v486_v9 = vpop.xlane.xlu2 %485  ;;  %v477_v13 = vpop.xlane.xlu0 %476 }
 0x177   : > { %v489_v10 = vpop.xlane.xlu1 %488  ;;  %v496_v11 = vsub.f32 %v461_v43, %v486_v9  ;;  %v493_v14 = vsub.f32 %v411_v47, %v477_v13 }
 0x178   : > { %v497_v12 = vsub.f32 %v464_v48, %v489_v10 }
 0x179   : > { %v925_v15 = vpop.eup %924  ;;  %v510_v16 = vmul.f32 1.442695, %v496_v11  ;;  %v504_v19 = vmul.f32 1.442695, %v493_v14 }
 0x17a   : > { %v512_v17 = vmul.f32 1.442695, %v497_v12  ;;  %v927_v18 = vpop.eup %926  ;;  %v520_v20 = vsel %vm359_vm0, %v925_v15, 0.0 }
 0x17b   : > { %928 = vpow2.f32 %v510_v16  ;;  %v529_v21 = vsel %vm359_vm0, %v927_v18, 0.0 }
 0x17c   : > { %930 = vpow2.f32 %v512_v17  ;;  %530 = vadd.xlane.f32.xlu2 %v529_v21  ;;  %521 = vadd.xlane.f32.xlu0 %v520_v20 }
 0x17d   : > { %932 = vpow2.f32 %v504_v19 }
 0x181   : > { %v929_v22 = vpop.eup %928 }
 0x182   : > { %v931_v23 = vpop.eup %930  ;;  %v532_v24 = vsel %vm359_vm0, %v929_v22, 0.0 }
 0x183   : > { %v933_v25 = vpop.eup %932  ;;  %533 = vadd.xlane.f32.xlu1 %v532_v24  ;;  %v535_v26 = vsel %vm359_vm0, %v931_v23, 0.0 }
 0x184   : > { %536 = vadd.xlane.f32.xlu0 %v535_v26  ;;  %v523_v27 = vsel %vm359_vm0, %v933_v25, 0.0 }
 0x185   : > { %524 = vadd.xlane.f32.xlu2 %v523_v27 }
 0x1de   : > { %v516_v36 = vpop.xlane.xlu2 %515 }
 0x1df   : > { %934 = vrcp.f32 %v516_v36 }
 0x1e5   : > { %v935_v37 = vpop.eup %934 }
 0x1e6   : > { %v519_v38 = vpop.xlane.xlu1 %518  ;;  %v546_v39 = vmul.f32 %v935_v37, %v1393_v59 }
 0x1e7   : > { %936 = vrcp.f32 %v519_v38  ;;  %v528_v40 = vpop.xlane.xlu0 %527 }
 0x1e8   : > { %938 = vrcp.f32 %v528_v40  ;;  %825 = vmatmul.msk.f32.vlgmr.msra.gmra.mxu2 %vm359_vm0, %v546_v39 }
 0x1ed   : > { %v937_v41 = vpop.eup %936 }
 0x1ee   : > { %v939_v42 = vpop.eup %938  ;;  %v547_v43 = vmul.f32 %v937_v41, %v1397_v3 }
 0x1ef   : > { %v531_v44 = vpop.xlane.xlu2 %530  ;;  %v522_v45 = vpop.xlane.xlu0 %521  ;;  %v550_v46 = vmul.f32 %v939_v42, %v1399_v6 }
 0x1f0   : > { %940 = vrcp.f32 %v531_v44  ;;  %826 = vmatmul.msk.f32.gmra.mxu2 %vm359_vm0, %v547_v43 }
 0x1f1   : > { %942 = vrcp.f32 %v522_v45  ;;  %829 = vmatmul.msk.f32.vlgmr.msra.gmra.mxu3 %vm359_vm0, %v550_v46 }
 0x1f6   : > { %v941_v47 = vpop.eup %940  ;;  %v534_v48 = vpop.xlane.xlu1 %533 }
 0x1f7   : > { %v943_v49 = vpop.eup %942  ;;  %944 = vrcp.f32 %v534_v48  ;;  %v551_v50 = vmul.f32 %v941_v47, %v927_v18  ;;  %v537_v53 = vpop.xlane.xlu0 %536 }
 0x1f8   : > { %v525_v51 = vpop.xlane.xlu2 %524  ;;  %v548_v52 = vmul.f32 %v943_v49, %v925_v15 }
 0x1f9   : > { %946 = vrcp.f32 %v525_v51  ;;  %830 = vmatmul.msk.f32.gmra.mxu3 %vm359_vm0, %v551_v50 }
 0x1fa   : > { %827 = vmatmul.msk.f32.gmra.mxu2 %vm359_vm0, %v548_v52  ;;  %948 = vrcp.f32 %v537_v53 }
 0x1fd   : > { %v945_v54 = vpop.eup %944 }
 0x1fe   : > { %v552_v55 = vmul.f32 %v945_v54, %v929_v22 }
 0x1ff   : > { %v947_v56 = vpop.eup %946 }
 0x200   : > { %v549_v57 = vmul.f32 %v947_v56, %v933_v25  ;;  %v949_v58 = vpop.eup %948 }
 0x201   : > { %831 = vmatmul.msk.f32.gmra.mxu3 %vm359_vm0, %v552_v55  ;;  %v553_v59 = vmul.f32 %v949_v58, %v931_v23 }
 0x202   : > { %828 = vmatmul.msk.f32.gmra.mxu2 %vm359_vm0, %v549_v57 }
 0x209   : > { %832 = vmatmul.msk.f32.gmra.mxu3 %vm359_vm0, %v553_v59 }
 0x26b   : > { %v583_v60 = vpop.f32.mrf.mxu2 }
 0x26c   : > { %636 = vst.msk [vmem:[%s318_s30] sm:$0xff] %vm359_vm0, %v583_v60 }
 0x273   : > { %v586_v61 = vpop.f32.mrf.mxu2 }
 0x274   : > { %637 = vst.msk [vmem:[%s318_s30 + $0x8] sm:$0xff] %vm359_vm0, %v586_v61  ;;  %v624_v62 = vpop.f32.mrf.mxu3 }
 0x275   : > { %640 = vst.msk [vmem:[%s318_s30 + $0x20] sm:$0xff] %vm359_vm0, %v624_v62 }
 0x27c   : > { %v627_v63 = vpop.f32.mrf.mxu3 }
 0x27d   : > { %v589_v0 = vpop.f32.mrf.mxu2  ;;  %641 = vst.msk [vmem:[%s318_s30 + $0x28] sm:$0xff] %vm359_vm0, %v627_v63 }
 0x27e   : > { %638 = vst.msk [vmem:[%s318_s30 + $0x10] sm:$0xff] %vm359_vm0, %v589_v0 }
 0x284   : > { %v630_v1 = vpop.f32.mrf.mxu3 }
 0x285   : > { %v592_v2 = vpop.f32.mrf.mxu2  ;;  %642 = vst.msk [vmem:[%s318_s30 + $0x30] sm:$0xff] %vm359_vm0, %v630_v1 }
 0x286   : > { %639 = vst.msk [vmem:[%s318_s30 + $0x18] sm:$0xff] %vm359_vm0, %v592_v2 }
 0x28c   : > { %v633_v3 = vpop.f32.mrf.mxu3 }
 0x28d   : > { %643 = vst.msk [vmem:[%s318_s30 + $0x38] sm:$0xff] %vm359_vm0, %v633_v3 }
 0x28e   : > { %1097 = shalt.err (!%p1094_p5)
}
 0x28f   : > { %s1149_s24 = smov 128   ;;  %s1150_s10 = smov 8  }
 0x290   : > { %857 = dma.vmem_to_hbm [thread:$0]  (%p1268_p11), %s659_s3, 1024, %s661_s22, %s645_s20, %s1149_s24, %s1149_s24, %s1150_s10  }
 0x291 PF: > { %s675_s13 = sand.u32 1, %s1132_s15   ;;  %p1491_p7 = scmp.ge.s32.totalorder %s1144_s18, 2 }
 0x292   : > { %s676_s26 = scalar_lea.sflag [#allocation4], %s675_s13 }
 0x293   : > { %p874_p10 = pnand %p1491_p7, %p1272_p12 }
 0x295   : > { %p875_p13 = pneg %p874_p10 }
 0x297   : > { %1127 = dma.done.wait (%p875_p13), %s676_s26, 1024  }
 0x298   : > { %1129 = vsyncadd (%p875_p13), %s676_s26, 4294966272  ;;  %s1492_s18 = sld [smem:[#allocation15_spill]]  ;;  %s1494_s15 = smov %s1136_s16 }
 0x299   : > { %s1493_s8 = sld [smem:[#allocation16_spill]]  ;;  %s1495_s16 = smov %s1140_s17 }
 0x29e   : > { %p21_p0 = scmp.ge.s32.totalorder %s1492_s18, 4  }
 0x29f   : > { %s1496_s17 = smov %s1493_s8 }
 0x2a0   :  { %23 = sbr.rel (!%p21_p0) target bundleno = 11 (0xb), region = 109 }
 0x2a5   :  { %682 = vsyncpa [#allocation3], 1 }
 0x2a6   :  { %684 = vsyncpa [#allocation3 + $0x1], 1 }
 0x2a7   :  { %685 = vsyncpa [#allocation6], 1 }
 0x2a8   :  { %687 = vsyncpa [#allocation6 + $0x1], 1 }
 0x2a9   :  { %688 = vsyncpa [#allocation9], 1 }
 0x2aa   :  { %689 = vsyncpa [#allocation4], 1 }
 0x2ab   :  { %691 = vsyncpa [#allocation4 + $0x1], 1 }

</bundles_post_ra>
